<compile_context>
chip_gen: v6e
topology: v6e:2x2x1
jax: 0.10.0
libtpu: 0.0.40
codegen_flags: <defaults>
</compile_context>

<pallas_src>
import jax
import jax.numpy as jnp
from jax.experimental import pallas as pl
from jax.experimental.pallas import tpu as pltpu


def _cdiv(a, b):
    return -(-a // b)


def _round_up(n, m):
    return ((n + m - 1) // m) * m


def _vmem_capacity_bytes():
    """Best-effort trace-time VMEM query; conservative (v7x-sized) fallback."""
    try:
        info = pltpu.get_tpu_info()
        for name in ("vmem_capacity_bytes", "vmem_size_bytes", "vmem_bytes"):
            v = getattr(info, name, None)
            if v:
                return int(v)
    except Exception:
        pass
    return 64 << 20


def _choose_tiling(B, D, itemsize):
    """Pick the batch-tile row count and a scoped-VMEM limit per generation."""
    vmem = _vmem_capacity_bytes()
    if vmem >= (100 << 20):
        # v5e / v6e: 128 MiB VMEM -> big blocks amortize the ~0.35us/step cost.
        target_block_bytes = 16 << 20     # per x buffer; x is double-buffered.
        vmem_limit = 64 << 20
        min_grid_steps = 1
    else:
        # v7x: 64 MiB VMEM per TensorCore; keep blocks at ~8 MiB and make sure
        # the grid has a few steps so the "parallel" batch axis can be sharded
        # across both TensorCores.
        target_block_bytes = 8 << 20
        vmem_limit = 40 << 20
        min_grid_steps = 4
    rows = target_block_bytes // max(1, D * itemsize)
    if min_grid_steps > 1:
        rows = min(rows, _round_up(_cdiv(B, min_grid_steps), 8))
    rows = max(8, (rows // 8) * 8)          # sublane multiple
    rows = min(rows, _round_up(B, 8))       # never larger than the batch
    return rows, vmem_limit


def _logistic_kernel(x_ref, w_ref, b_ref, o_ref):
    # x_ref: (TB, D) native dtype VMEM, w_ref: (D, 1) native dtype VMEM,
    # b_ref: (1,) f32 SMEM, o_ref: (TB, 1) VMEM.
    #
    # N=1 matmul on the MXU (f32 accumulation).  The MXU is otherwise idle in
    # this kernel, so this keeps the VALU/EUP slots free and the kernel stays
    # on the HBM roofline even for bf16 inputs on v7x.
    z = jnp.dot(x_ref[...], w_ref[...], preferred_element_type=jnp.float32)  # (TB, 1)
    z = z + b_ref[0]                                                         # SMEM scalar bias
    # sigmoid(z) = 1 / (1 + exp(-z)); exp and the approximate reciprocal both
    # land on the EUP slot, leaving VALU slack.
    y = pl.reciprocal(1.0 + jnp.exp(-z), approx=True)
    # NOTE: a lane-dense (1, TB) / (TB//128, 128) output layout would further
    # cut masked-store + EUP waste for small D, but needs an in-kernel
    # column->row relayout whose Mosaic lowering is not guaranteed across all
    # generations; the plain (TB, 1) store is kept for compile robustness.
    o_ref[...] = y.astype(o_ref.dtype)


def logistic_classifier(x, weight, bias, block_rows=None):
    """y = sigmoid(x @ W^T + b).  x: (B, D), weight: (1, D), bias: (1,) -> (B, 1)."""
    B, D = x.shape
    out_dtype = x.dtype
    itemsize = jnp.dtype(x.dtype).itemsize

    # Weight as a (D, 1) column in the native compute dtype (MXU consumes bf16
    # directly -> a bf16 model streams half the bytes); bias as an f32 scalar
    # headed for SMEM.
    w_col = weight.reshape(D, 1).astype(x.dtype)
    b1d = bias.reshape(1).astype(jnp.float32)

    tb_auto, vmem_limit = _choose_tiling(B, D, itemsize)
    tb = tb_auto if block_rows is None else max(8, (int(block_rows) // 8) * 8)

    # Ragged last tile instead of padding x in HBM (this op is HBM-bound; the
    # old jnp.pad cost up to two extra full passes over x).  Overhang rows of
    # the last tile compute garbage that is never written back.
    num_tiles = _cdiv(B, tb)

    cost = pl.CostEstimate(
        flops=2 * B * D,
        transcendentals=B,
        bytes_accessed=(B * D * itemsize                     # x stream
                        + D * itemsize + 4                   # weight + bias
                        + B * jnp.dtype(out_dtype).itemsize  # output column
                        ),
    )

    out = pl.pallas_call(
        _logistic_kernel,
        out_shape=jax.ShapeDtypeStruct((B, 1), out_dtype),
        grid=(num_tiles,),
        in_specs=[
            pl.BlockSpec((tb, D), lambda i: (i, 0)),            # x: batch-tiled, double-buffered
            pl.BlockSpec((D, 1), lambda i: (0, 0)),             # weight: resident column
            pl.BlockSpec(memory_space=pltpu.MemorySpace.SMEM),  # bias: scalar in SMEM
        ],
        out_specs=pl.BlockSpec((tb, 1), lambda i: (i, 0)),
        compiler_params=pltpu.CompilerParams(
            # "parallel" lets v7x shard batch tiles across its 2 TensorCores;
            # it is a no-op on single-TC v5e/v6e.  (If plain "parallel" does
            # not split the grid on v7x, switch to pltpu.CORE_PARALLEL.)
            dimension_semantics=("parallel",),
            vmem_limit_bytes=vmem_limit,
        ),
        cost_estimate=cost,
    )(x, w_col, b1d)

    return out


if __name__ == "__main__":
    batch = 8
    embedding_dim = 32

    key = jax.random.PRNGKey(0)
    kx, kw, kb = jax.random.split(key, 3)

    # Deterministic parameter init mirroring nn.Linear(embedding_dim, 1):
    # uniform(-1/sqrt(D), 1/sqrt(D)) for both weight and bias.
    bound = 1.0 / (embedding_dim ** 0.5)
    weight = jax.random.uniform(kw, (1, embedding_dim), jnp.float32, -bound, bound)
    bias = jax.random.uniform(kb, (1,), jnp.float32, -bound, bound)

    x = jax.random.normal(kx, (batch, embedding_dim), jnp.float32)

    out = logistic_classifier(x, weight, bias)
    out = jax.block_until_ready(out)

    # Reference in plain JAX (same math as torch: sigmoid(x @ W.T + b)).
    ref = jax.nn.sigmoid(x @ weight.T + bias)
    assert out.shape == (batch, 1)
    # approx reciprocal on the EUP -> ~1e-3 relative error budget.
    assert jnp.allclose(out, ref, atol=2e-3, rtol=2e-3), "mismatch vs reference"

    print("KERNEL_OK")
</pallas_src>

<mosaic_0001>
module attributes {stable_mosaic.version = 11 : i64} {
  func.func @_logistic_kernel(%arg0: i32, %arg1: memref<8x32xf32, #tpu.memory_space<vmem>>, %arg2: memref<32x1xf32, #tpu.memory_space<vmem>>, %arg3: memref<1xf32, #tpu.memory_space<smem>>, %arg4: memref<8x1xf32, #tpu.memory_space<vmem>>) attributes {dimension_semantics = [#tpu.dimension_semantics<parallel>], iteration_bounds = array<i64: 1>, scalar_prefetch = 0 : i64, scratch_operands = 0 : i64, tpu.core_type = #tpu.core_type<tc>, window_params = [{transform_indices = @transform_0, window_bounds = array<i64: 8, 32>}, {pipeline_mode = #tpu.pipeline_mode<synchronous>, transform_indices = @transform_1, window_bounds = array<i64: 32, 1>}, {transform_indices = @transform_2, window_bounds = array<i64: 1>}, {transform_indices = @transform_3, window_bounds = array<i64: 8, 1>}]} {
    %c0 = arith.constant 0 : index
    %c0_0 = arith.constant 0 : index
    %0 = vector.load %arg1[%c0, %c0_0] : memref<8x32xf32, #tpu.memory_space<vmem>>, vector<8x32xf32>
    %c0_1 = arith.constant 0 : index
    %c0_2 = arith.constant 0 : index
    %1 = vector.load %arg2[%c0_1, %c0_2] : memref<32x1xf32, #tpu.memory_space<vmem>>, vector<32x1xf32>
    %cst = arith.constant dense<0.000000e+00> : vector<8x1xf32>
    %2 = tpu.matmul %0, %1, %cst {dimension_numbers = #tpu.dot_dimension_numbers<[1], [0], [0], [1], [0, 0, 1, 1], [], []>} : vector<8x32xf32>, vector<32x1xf32>, vector<8x1xf32> -> vector<8x1xf32>
    %c0_3 = arith.constant 0 : index
    %3 = memref.load %arg3[%c0_3] : memref<1xf32, #tpu.memory_space<smem>>
    %4 = vector.broadcast %3 : f32 to vector<8x1xf32>
    %5 = arith.addf %2, %4 : vector<8x1xf32>
    %cst_4 = arith.constant 0.000000e+00 : f32
    %6 = vector.broadcast %cst_4 : f32 to vector<8x1xf32>
    %7 = arith.subf %6, %5 : vector<8x1xf32>
    %8 = math.exp %7 : vector<8x1xf32>
    %cst_5 = arith.constant 1.000000e+00 : f32
    %9 = vector.broadcast %cst_5 : f32 to vector<8x1xf32>
    %10 = arith.addf %9, %8 : vector<8x1xf32>
    %11 = tpu.reciprocal %10 {approx = true} : vector<8x1xf32> -> vector<8x1xf32>
    %c0_6 = arith.constant 0 : index
    %c0_7 = arith.constant 0 : index
    %12 = vector.load %arg4[%c0_6, %c0_7] : memref<8x1xf32, #tpu.memory_space<vmem>>, vector<8x1xf32>
    tpu.vector_store %arg4[%c0_6, %c0_7], %11 {strides = array<i32>} : memref<8x1xf32, #tpu.memory_space<vmem>>, vector<8x1xf32>,
    return
  }
  func.func @transform_0(%arg0: i32) -> (i32, i32) {
    %c0_i32 = arith.constant 0 : i32
    %c0_i32_0 = arith.constant 0 : i32
    return %arg0, %c0_i32 : i32, i32
  }
  func.func @transform_1(%arg0: i32) -> (i32, i32) {
    %c0_i32 = arith.constant 0 : i32
    %c0_i32_0 = arith.constant 0 : i32
    %c0_i32_1 = arith.constant 0 : i32
    return %c0_i32, %c0_i32_0 : i32, i32
  }
  func.func @transform_2(%arg0: i32) -> i32 {
    %c0_i32 = arith.constant 0 : i32
    %c0_i32_0 = arith.constant 0 : i32
    return %c0_i32 : i32
  }
  func.func @transform_3(%arg0: i32) -> (i32, i32) {
    %c0_i32 = arith.constant 0 : i32
    %c0_i32_0 = arith.constant 0 : i32
    return %arg0, %c0_i32 : i32, i32
  }
}

</mosaic_0001>

<bundles_post_ra>
// kernel: tpu_custom_call.1
= control target key start
LH: loop header
LB: loop body
LE: loop exit
PB: predicated region body
PF: predicated region fallthrough
CT: control target
= control target key end

     0   :  { %v130_v0 = vmov 0.0   ;;  %vm131_vm0 = vmmov 0   ;;  %vm22_vm1 = vcmask 261120   ;;  %vm101_vm2 = vcmask 7168   ;;  %s173_s1 = inlined_call_operand.vmem [shape: f32[32,1], index: 1, kind: input, shape index: {}]   ;;  %s174_s0 = inlined_call_operand.vmem [shape: f32[8,32], index: 0, kind: input, shape index: {}]   ;;  %s175_s2 = inlined_call_operand.<no memory space> [shape: f32[1], index: 2, kind: input, shape index: {}]   ;;  %s176_s3 = inlined_call_operand.vmem [shape: f32[8,1], index: 3, kind: output, shape index: {}]  }
   0x1   :  { %113 = vmatprep.subr.mxu0 %v130_v0  ;;  %v19_v1 = vld [vmem:[%s173_s1 + $0x18] sm:$0xff]  ;;  %v18_v2 = vld [vmem:[%s173_s1 + $0x10] sm:$0xff]  ;;  %121 = vmatprep.mubr.msk.f32.mxu0 %vm131_vm0, %v130_v0  ;;  %v17_v3 = vld [vmem:[%s173_s1 + $0x8] sm:$0xff]  ;;  %v21_v6 = vstv %s175_s2 }
   0x2   :  { %114 = vmatpush3.msra.mxu0 %v19_v1  ;;  %v16_v4 = vld [vmem:[%s173_s1] sm:$0xff] }
   0x3   :  { %115 = vmatprep.subr.mxu0 %v130_v0  ;;  %v15_v5 = vld [vmem:[%s174_s0] sm:$0xff] }
   0x4   :  { %116 = vmatpush3.msra.mxu0 %v18_v2 }
   0x5   :  { %117 = vmatprep.subr.mxu0 %v130_v0 }
   0x6   :  { %118 = vmatpush3.msra.mxu0 %v17_v3 }
   0x7   :  { %119 = vmatprep.subr.mxu0 %v130_v0 }
   0x8   :  { %120 = vmatpush3.msra.mxu0 %v16_v4 }
   0x9   :  { %122 = vmatmul.mubr.msk.f32.vlgmr.msra.gmra.mxu0 %vm22_vm1, %v15_v5 }
  0xc9   :  { %v92_v7 = vpop.f32.mrf.mxu0 }
  0xca   :  { %v93_v8 = vadd.f32 %v92_v7, %v21_v6 }
  0xcb   :  { %v123_v9 = vpop.f32.mrf.mxu0 }
  0xcc   :  { %v96_v10 = vsub.f32 0.0, %v93_v8 }
  0xce   :  { %v97_v11 = vmul.f32 1.442695, %v96_v10 }
  0xd0   :  { %126 = vpow2.f32 %v97_v11 }
  0xdd   :  { %v127_v12 = vpop.eup %126 }
  0xde   :  { %v99_v13 = vadd.f32 1.0, %v127_v12 }
  0xe0   :  { %128 = vrcp.f32 %v99_v13 }
  0xed   :  { %v129_v14 = vpop.eup %128 }
  0xee   :  { %102 = vst.msk [vmem:[%s176_s3] sm:$0xff] %vm101_vm2, %v129_v14 }

</bundles_post_ra>
